<compile_context>
chip_gen: v5e
topology: v5e:2x2
jax: 0.10.0
libtpu: 0.0.40
codegen_flags: <defaults>
</compile_context>

<pallas_src>
import functools

import jax
import jax.numpy as jnp
import numpy as np
from jax.experimental import pallas as pl
from jax.experimental.pallas import tpu as pltpu


def _resblock_kernel(x_ref, bn_ref, m_ref, w1_ref, w2_ref, o_ref, *, W, C, N):
    """One block of Bt lane-concatenated images.  x_ref block: (1, C, N)."""
    x = x_ref[0]                                        # (C, N) f32

    bn = bn_ref[...]                                    # (C, 3): [s1, b1, b2]
    s1, b1, b2 = bn[:, 0:1], bn[:, 1:2], bn[:, 2:3]     # (C, 1) lane-broadcast

    # 3x3 tap offsets along the flattened spatial axis (static Python ints).
    offsets = [dy * W + dx for dy in (-1, 0, 1) for dx in (-1, 0, 1)]

    def conv3x3(y, w_ref):
        # im2col kept register-resident: 9 lane-rolled + border-masked copies
        # of y (no VMEM scratch -> no misaligned partial stores + reload).
        taps = []
        for t, off in enumerate(offsets):
            if off == 0:
                taps.append(y)                          # center tap: all-valid
            else:
                shifted = pltpu.roll(y, (-off) % N, axis=1)
                taps.append(shifted * m_ref[t * C:(t + 1) * C, :])
        patches = jnp.concatenate(taps, axis=0)         # (9C, N)
        # One fused MXU matmul per conv: (C, 9C) @ (9C, N) -> (C, N).
        return jnp.dot(w_ref[...], patches, preferred_element_type=jnp.float32)

    y1 = jnp.maximum(x * s1 + b1, 0.0)                  # BN1 (folded) + ReLU
    o1 = conv3x3(y1, w1_ref)                            # scale2 pre-folded in w1
    y2 = jnp.maximum(o1 + b2, 0.0)                      # BN2 + Dropout(eval) + ReLU
    o2 = conv3x3(y2, w2_ref)
    o_ref[0] = (o2 + x).astype(o_ref.dtype)             # residual add


def residual_block_forward(x_nchw, scale1, shift1, scale2, shift2,
                           w1_hwio, w2_hwio, *, num_steps=1):
    """x_nchw: (B, C, H, W) f32; scale/shift: (C,); weights: (3, 3, Cin, Cout)."""
    B, C, H, W = x_nchw.shape
    HW = H * W
    assert B % num_steps == 0, "num_steps must divide the batch"
    Bt = B // num_steps
    N = Bt * HW

    # Lane-concatenate Bt images per grid step: (num_steps, C, Bt*HW).
    x_blk = jnp.transpose(x_nchw.reshape(num_steps, Bt, C, HW),
                          (0, 2, 1, 3)).reshape(num_steps, C, N)

    # Folded eval-mode BN params.  scale2 is folded into conv1's weights
    # (diag(s2) @ W1), so only [s1, b1, b2] reach the kernel.
    bn = jnp.stack([scale1, shift1, shift2], axis=1)                 # (C, 3)
    # (3,3,Ci,Co) -> (Co, 9*Ci); column = (ky*3+kx)*Ci + ci, matching tap order.
    w1m = jnp.transpose(w1_hwio, (3, 0, 1, 2)).reshape(C, 9 * C)
    w1m = scale2[:, None] * w1m
    w2m = jnp.transpose(w2_hwio, (3, 0, 1, 2)).reshape(C, 9 * C)

    # Border-validity masks for the 9 taps, precomputed once on the host and
    # pre-broadcast over channels: (9*C, N) of 0/1 f32 (tiny, one-time DMA).
    pos = np.arange(HW)
    hh, ww = pos // W, pos % W
    rows = []
    for dy in (-1, 0, 1):
        for dx in (-1, 0, 1):
            valid = ((hh + dy >= 0) & (hh + dy < H) &
                     (ww + dx >= 0) & (ww + dx < W)).astype(np.float32)
            rows.append(np.tile(valid, Bt))                          # (N,)
    masks = jnp.asarray(
        np.repeat(np.stack(rows, 0)[:, None, :], C, axis=1).reshape(9 * C, N))

    kernel = functools.partial(_resblock_kernel, W=W, C=C, N=N)
    out_blk = pl.pallas_call(
        kernel,
        out_shape=jax.ShapeDtypeStruct((num_steps, C, N), x_blk.dtype),
        grid_spec=pltpu.PrefetchScalarGridSpec(
            num_scalar_prefetch=0,
            grid=(num_steps,),
            in_specs=[
                pl.BlockSpec((1, C, N), lambda s: (s, 0, 0)),        # x slab
                pl.BlockSpec((C, 3), lambda s: (0, 0)),              # [s1,b1,b2]
                pl.BlockSpec((9 * C, N), lambda s: (0, 0)),          # tap masks
                pl.BlockSpec((C, 9 * C), lambda s: (0, 0)),          # diag(s2)@W1
                pl.BlockSpec((C, 9 * C), lambda s: (0, 0)),          # W2
            ],
            out_specs=pl.BlockSpec((1, C, N), lambda s: (s, 0, 0)),
        ),
        compiler_params=pltpu.CompilerParams(
            dimension_semantics=("parallel",)),
        cost_estimate=pl.CostEstimate(
            flops=2 * 2 * C * (9 * C) * HW * B,                      # 2 convs
            transcendentals=0,
            bytes_accessed=(2 * B * C * HW + 2 * 9 * C * C + 9 * C * N) * 4),
    )(x_blk, bn, masks, w1m, w2m)

    return jnp.transpose(out_blk.reshape(num_steps, C, Bt, HW),
                         (0, 2, 1, 3)).reshape(B, C, H, W)


def _reference_forward(x_nchw, scale1, shift1, scale2, shift2, w1, w2):
    """Pure-JAX reference (same eval-mode semantics)."""
    x = jnp.transpose(x_nchw, (0, 2, 3, 1))             # NHWC
    y1 = jnp.maximum(x * scale1 + shift1, 0.0)
    o1 = jax.lax.conv_general_dilated(
        y1, w1, window_strides=(1, 1), padding="SAME",
        dimension_numbers=("NHWC", "HWIO", "NHWC"))
    y2 = jnp.maximum(o1 * scale2 + shift2, 0.0)
    o2 = jax.lax.conv_general_dilated(
        y2, w2, window_strides=(1, 1), padding="SAME",
        dimension_numbers=("NHWC", "HWIO", "NHWC"))
    return jnp.transpose(o2 + x, (0, 3, 1, 2))


if __name__ == "__main__":
    # config.filters = 4; dropout irrelevant in eval mode.
    B, C, H, W = 2, 4, 16, 16
    eps = 1e-5

    key = jax.random.PRNGKey(0)
    kx, kg1, kb1, km1, kv1, kg2, kb2, km2, kv2, kw1, kw2 = jax.random.split(key, 11)

    x = jax.random.normal(kx, (B, C, H, W), jnp.float32)

    # BatchNorm2d parameters + running stats (deterministic synthetic init).
    gamma1 = jax.random.normal(kg1, (C,), jnp.float32) * 0.1 + 1.0
    beta1 = jax.random.normal(kb1, (C,), jnp.float32) * 0.1
    mean1 = jax.random.normal(km1, (C,), jnp.float32) * 0.1
    var1 = jax.random.uniform(kv1, (C,), jnp.float32, 0.5, 1.5)
    gamma2 = jax.random.normal(kg2, (C,), jnp.float32) * 0.1 + 1.0
    beta2 = jax.random.normal(kb2, (C,), jnp.float32) * 0.1
    mean2 = jax.random.normal(km2, (C,), jnp.float32) * 0.1
    var2 = jax.random.uniform(kv2, (C,), jnp.float32, 0.5, 1.5)

    # Fold BN into per-channel scale/shift (eval mode).
    scale1 = gamma1 / jnp.sqrt(var1 + eps)
    shift1 = beta1 - mean1 * scale1
    scale2 = gamma2 / jnp.sqrt(var2 + eps)
    shift2 = beta2 - mean2 * scale2

    # Conv weights, HWIO layout (3, 3, C_in, C_out); equivalent to PyTorch
    # (C_out, C_in, 3, 3) transposed by (2, 3, 1, 0).
    w1 = jax.random.normal(kw1, (3, 3, C, C), jnp.float32) * 0.1
    w2 = jax.random.normal(kw2, (3, 3, C, C), jnp.float32) * 0.1

    out = residual_block_forward(x, scale1, shift1, scale2, shift2, w1, w2)
    out = jax.block_until_ready(out)

    ref = _reference_forward(x, scale1, shift1, scale2, shift2, w1, w2)
    np.testing.assert_allclose(np.asarray(out), np.asarray(ref),
                               rtol=1e-4, atol=1e-4)

    print("KERNEL_OK")
</pallas_src>

<mosaic_0001>
module attributes {stable_mosaic.version = 11 : i64} {
  func.func @_resblock_kernel(%arg0: i32, %arg1: memref<1x4x512xf32, #tpu.memory_space<vmem>>, %arg2: memref<4x3xf32, #tpu.memory_space<vmem>>, %arg3: memref<36x512xf32, #tpu.memory_space<vmem>>, %arg4: memref<4x36xf32, #tpu.memory_space<vmem>>, %arg5: memref<4x36xf32, #tpu.memory_space<vmem>>, %arg6: memref<1x4x512xf32, #tpu.memory_space<vmem>>) attributes {dimension_semantics = [#tpu.dimension_semantics<parallel>], iteration_bounds = array<i64: 1>, scalar_prefetch = 0 : i64, scratch_operands = 0 : i64, tpu.core_type = #tpu.core_type<tc>, window_params = [{transform_indices = @transform_0, window_bounds = array<i64: 1, 4, 512>}, {pipeline_mode = #tpu.pipeline_mode<synchronous>, transform_indices = @transform_1, window_bounds = array<i64: 4, 3>}, {pipeline_mode = #tpu.pipeline_mode<synchronous>, transform_indices = @transform_2, window_bounds = array<i64: 36, 512>}, {pipeline_mode = #tpu.pipeline_mode<synchronous>, transform_indices = @transform_3, window_bounds = array<i64: 4, 36>}, {pipeline_mode = #tpu.pipeline_mode<synchronous>, transform_indices = @transform_4, window_bounds = array<i64: 4, 36>}, {transform_indices = @transform_5, window_bounds = array<i64: 1, 4, 512>}]} {
    %c0 = arith.constant 0 : index
    %c0_0 = arith.constant 0 : index
    %c0_1 = arith.constant 0 : index
    %0 = vector.load %arg1[%c0, %c0_0, %c0_1] : memref<1x4x512xf32, #tpu.memory_space<vmem>>, vector<1x4x512xf32>
    %1 = vector.shape_cast %0 : vector<1x4x512xf32> to vector<4x512xf32>
    %c0_2 = arith.constant 0 : index
    %c0_3 = arith.constant 0 : index
    %2 = vector.load %arg2[%c0_2, %c0_3] : memref<4x3xf32, #tpu.memory_space<vmem>>, vector<4x3xf32>
    %3 = vector.extract_strided_slice %2 {offsets = [0, 0], sizes = [4, 1], strides = [1, 1]} : vector<4x3xf32> to vector<4x1xf32>
    %4 = vector.extract_strided_slice %2 {offsets = [0, 1], sizes = [4, 1], strides = [1, 1]} : vector<4x3xf32> to vector<4x1xf32>
    %5 = vector.extract_strided_slice %2 {offsets = [0, 2], sizes = [4, 1], strides = [1, 1]} : vector<4x3xf32> to vector<4x1xf32>
    %6 = vector.broadcast %3 : vector<4x1xf32> to vector<4x512xf32>
    %7 = arith.mulf %1, %6 : vector<4x512xf32>
    %8 = vector.broadcast %4 : vector<4x1xf32> to vector<4x512xf32>
    %9 = arith.addf %7, %8 : vector<4x512xf32>
    %cst = arith.constant 0.000000e+00 : f32
    %10 = vector.broadcast %cst : f32 to vector<4x512xf32>
    %11 = arith.maximumf %9, %10 : vector<4x512xf32>
    %c17_i32 = arith.constant 17 : i32
    %12 = tpu.dynamic_rotate %11 by %c17_i32 dim 1 : vector<4x512xf32>, i32 -> vector<4x512xf32>
    %c0_4 = arith.constant 0 : index
    %c0_5 = arith.constant 0 : index
    %13 = vector.load %arg3[%c0_4, %c0_5] : memref<36x512xf32, #tpu.memory_space<vmem>>, vector<4x512xf32>
    %14 = arith.mulf %12, %13 : vector<4x512xf32>
    %c16_i32 = arith.constant 16 : i32
    %15 = tpu.dynamic_rotate %11 by %c16_i32 dim 1 : vector<4x512xf32>, i32 -> vector<4x512xf32>
    %c4 = arith.constant 4 : index
    %c0_6 = arith.constant 0 : index
    %16 = vector.load %arg3[%c4, %c0_6] : memref<36x512xf32, #tpu.memory_space<vmem>>, vector<4x512xf32>
    %17 = arith.mulf %15, %16 : vector<4x512xf32>
    %c15_i32 = arith.constant 15 : i32
    %18 = tpu.dynamic_rotate %11 by %c15_i32 dim 1 : vector<4x512xf32>, i32 -> vector<4x512xf32>
    %c8 = arith.constant 8 : index
    %c0_7 = arith.constant 0 : index
    %19 = vector.load %arg3[%c8, %c0_7] : memref<36x512xf32, #tpu.memory_space<vmem>>, vector<4x512xf32>
    %20 = arith.mulf %18, %19 : vector<4x512xf32>
    %c1_i32 = arith.constant 1 : i32
    %21 = tpu.dynamic_rotate %11 by %c1_i32 dim 1 : vector<4x512xf32>, i32 -> vector<4x512xf32>
    %c12 = arith.constant 12 : index
    %c0_8 = arith.constant 0 : index
    %22 = vector.load %arg3[%c12, %c0_8] : memref<36x512xf32, #tpu.memory_space<vmem>>, vector<4x512xf32>
    %23 = arith.mulf %21, %22 : vector<4x512xf32>
    %c511_i32 = arith.constant 511 : i32
    %24 = tpu.dynamic_rotate %11 by %c511_i32 dim 1 : vector<4x512xf32>, i32 -> vector<4x512xf32>
    %c20 = arith.constant 20 : index
    %c0_9 = arith.constant 0 : index
    %25 = vector.load %arg3[%c20, %c0_9] : memref<36x512xf32, #tpu.memory_space<vmem>>, vector<4x512xf32>
    %26 = arith.mulf %24, %25 : vector<4x512xf32>
    %c497_i32 = arith.constant 497 : i32
    %27 = tpu.dynamic_rotate %11 by %c497_i32 dim 1 : vector<4x512xf32>, i32 -> vector<4x512xf32>
    %c24 = arith.constant 24 : index
    %c0_10 = arith.constant 0 : index
    %28 = vector.load %arg3[%c24, %c0_10] : memref<36x512xf32, #tpu.memory_space<vmem>>, vector<4x512xf32>
    %29 = arith.mulf %27, %28 : vector<4x512xf32>
    %c496_i32 = arith.constant 496 : i32
    %30 = tpu.dynamic_rotate %11 by %c496_i32 dim 1 : vector<4x512xf32>, i32 -> vector<4x512xf32>
    %c28 = arith.constant 28 : index
    %c0_11 = arith.constant 0 : index
    %31 = vector.load %arg3[%c28, %c0_11] : memref<36x512xf32, #tpu.memory_space<vmem>>, vector<4x512xf32>
    %32 = arith.mulf %30, %31 : vector<4x512xf32>
    %c495_i32 = arith.constant 495 : i32
    %33 = tpu.dynamic_rotate %11 by %c495_i32 dim 1 : vector<4x512xf32>, i32 -> vector<4x512xf32>
    %c32 = arith.constant 32 : index
    %c0_12 = arith.constant 0 : index
    %34 = vector.load %arg3[%c32, %c0_12] : memref<36x512xf32, #tpu.memory_space<vmem>>, vector<4x512xf32>
    %35 = arith.mulf %33, %34 : vector<4x512xf32>
    %36 = tpu.concatenate %14, %17, %20, %23, %11, %26, %29, %32, %35 in 0 : vector<4x512xf32>, vector<4x512xf32>, vector<4x512xf32>, vector<4x512xf32>, vector<4x512xf32>, vector<4x512xf32>, vector<4x512xf32>, vector<4x512xf32>, vector<4x512xf32> -> vector<36x512xf32>
    %c0_13 = arith.constant 0 : index
    %c0_14 = arith.constant 0 : index
    %37 = vector.load %arg4[%c0_13, %c0_14] : memref<4x36xf32, #tpu.memory_space<vmem>>, vector<4x36xf32>
    %cst_15 = arith.constant dense<0.000000e+00> : vector<4x512xf32>
    %38 = tpu.matmul %37, %36, %cst_15 {dimension_numbers = #tpu.dot_dimension_numbers<[1], [0], [0], [1], [0, 0, 1, 1], [], []>} : vector<4x36xf32>, vector<36x512xf32>, vector<4x512xf32> -> vector<4x512xf32>
    %39 = vector.broadcast %5 : vector<4x1xf32> to vector<4x512xf32>
    %40 = arith.addf %38, %39 : vector<4x512xf32>
    %cst_16 = arith.constant 0.000000e+00 : f32
    %41 = vector.broadcast %cst_16 : f32 to vector<4x512xf32>
    %42 = arith.maximumf %40, %41 : vector<4x512xf32>
    %c17_i32_17 = arith.constant 17 : i32
    %43 = tpu.dynamic_rotate %42 by %c17_i32_17 dim 1 : vector<4x512xf32>, i32 -> vector<4x512xf32>
    %c0_18 = arith.constant 0 : index
    %c0_19 = arith.constant 0 : index
    %44 = vector.load %arg3[%c0_18, %c0_19] : memref<36x512xf32, #tpu.memory_space<vmem>>, vector<4x512xf32>
    %45 = arith.mulf %43, %44 : vector<4x512xf32>
    %c16_i32_20 = arith.constant 16 : i32
    %46 = tpu.dynamic_rotate %42 by %c16_i32_20 dim 1 : vector<4x512xf32>, i32 -> vector<4x512xf32>
    %c4_21 = arith.constant 4 : index
    %c0_22 = arith.constant 0 : index
    %47 = vector.load %arg3[%c4_21, %c0_22] : memref<36x512xf32, #tpu.memory_space<vmem>>, vector<4x512xf32>
    %48 = arith.mulf %46, %47 : vector<4x512xf32>
    %c15_i32_23 = arith.constant 15 : i32
    %49 = tpu.dynamic_rotate %42 by %c15_i32_23 dim 1 : vector<4x512xf32>, i32 -> vector<4x512xf32>
    %c8_24 = arith.constant 8 : index
    %c0_25 = arith.constant 0 : index
    %50 = vector.load %arg3[%c8_24, %c0_25] : memref<36x512xf32, #tpu.memory_space<vmem>>, vector<4x512xf32>
    %51 = arith.mulf %49, %50 : vector<4x512xf32>
    %c1_i32_26 = arith.constant 1 : i32
    %52 = tpu.dynamic_rotate %42 by %c1_i32_26 dim 1 : vector<4x512xf32>, i32 -> vector<4x512xf32>
    %c12_27 = arith.constant 12 : index
    %c0_28 = arith.constant 0 : index
    %53 = vector.load %arg3[%c12_27, %c0_28] : memref<36x512xf32, #tpu.memory_space<vmem>>, vector<4x512xf32>
    %54 = arith.mulf %52, %53 : vector<4x512xf32>
    %c511_i32_29 = arith.constant 511 : i32
    %55 = tpu.dynamic_rotate %42 by %c511_i32_29 dim 1 : vector<4x512xf32>, i32 -> vector<4x512xf32>
    %c20_30 = arith.constant 20 : index
    %c0_31 = arith.constant 0 : index
    %56 = vector.load %arg3[%c20_30, %c0_31] : memref<36x512xf32, #tpu.memory_space<vmem>>, vector<4x512xf32>
    %57 = arith.mulf %55, %56 : vector<4x512xf32>
    %c497_i32_32 = arith.constant 497 : i32
    %58 = tpu.dynamic_rotate %42 by %c497_i32_32 dim 1 : vector<4x512xf32>, i32 -> vector<4x512xf32>
    %c24_33 = arith.constant 24 : index
    %c0_34 = arith.constant 0 : index
    %59 = vector.load %arg3[%c24_33, %c0_34] : memref<36x512xf32, #tpu.memory_space<vmem>>, vector<4x512xf32>
    %60 = arith.mulf %58, %59 : vector<4x512xf32>
    %c496_i32_35 = arith.constant 496 : i32
    %61 = tpu.dynamic_rotate %42 by %c496_i32_35 dim 1 : vector<4x512xf32>, i32 -> vector<4x512xf32>
    %c28_36 = arith.constant 28 : index
    %c0_37 = arith.constant 0 : index
    %62 = vector.load %arg3[%c28_36, %c0_37] : memref<36x512xf32, #tpu.memory_space<vmem>>, vector<4x512xf32>
    %63 = arith.mulf %61, %62 : vector<4x512xf32>
    %c495_i32_38 = arith.constant 495 : i32
    %64 = tpu.dynamic_rotate %42 by %c495_i32_38 dim 1 : vector<4x512xf32>, i32 -> vector<4x512xf32>
    %c32_39 = arith.constant 32 : index
    %c0_40 = arith.constant 0 : index
    %65 = vector.load %arg3[%c32_39, %c0_40] : memref<36x512xf32, #tpu.memory_space<vmem>>, vector<4x512xf32>
    %66 = arith.mulf %64, %65 : vector<4x512xf32>
    %67 = tpu.concatenate %45, %48, %51, %54, %42, %57, %60, %63, %66 in 0 : vector<4x512xf32>, vector<4x512xf32>, vector<4x512xf32>, vector<4x512xf32>, vector<4x512xf32>, vector<4x512xf32>, vector<4x512xf32>, vector<4x512xf32>, vector<4x512xf32> -> vector<36x512xf32>
    %c0_41 = arith.constant 0 : index
    %c0_42 = arith.constant 0 : index
    %68 = vector.load %arg5[%c0_41, %c0_42] : memref<4x36xf32, #tpu.memory_space<vmem>>, vector<4x36xf32>
    %cst_43 = arith.constant dense<0.000000e+00> : vector<4x512xf32>
    %69 = tpu.matmul %68, %67, %cst_43 {dimension_numbers = #tpu.dot_dimension_numbers<[1], [0], [0], [1], [0, 0, 1, 1], [], []>} : vector<4x36xf32>, vector<36x512xf32>, vector<4x512xf32> -> vector<4x512xf32>
    %70 = arith.addf %69, %1 : vector<4x512xf32>
    %c0_44 = arith.constant 0 : index
    %c0_45 = arith.constant 0 : index
    %c0_46 = arith.constant 0 : index
    %71 = vector.load %arg6[%c0_44, %c0_45, %c0_46] : memref<1x4x512xf32, #tpu.memory_space<vmem>>, vector<1x4x512xf32>
    %72 = vector.shape_cast %71 : vector<1x4x512xf32> to vector<4x512xf32>
    %73 = vector.shape_cast %70 : vector<4x512xf32> to vector<1x4x512xf32>
    tpu.vector_store %arg6[%c0_44, %c0_45, %c0_46], %73 {strides = array<i32>} : memref<1x4x512xf32, #tpu.memory_space<vmem>>, vector<1x4x512xf32>,
    return
  }
  func.func @transform_0(%arg0: i32) -> (i32, i32, i32) {
    %c0_i32 = arith.constant 0 : i32
    %c0_i32_0 = arith.constant 0 : i32
    %c0_i32_1 = arith.constant 0 : i32
    return %arg0, %c0_i32, %c0_i32_0 : i32, i32, i32
  }
  func.func @transform_1(%arg0: i32) -> (i32, i32) {
    %c0_i32 = arith.constant 0 : i32
    %c0_i32_0 = arith.constant 0 : i32
    %c0_i32_1 = arith.constant 0 : i32
    return %c0_i32, %c0_i32_0 : i32, i32
  }
  func.func @transform_2(%arg0: i32) -> (i32, i32) {
    %c0_i32 = arith.constant 0 : i32
    %c0_i32_0 = arith.constant 0 : i32
    %c0_i32_1 = arith.constant 0 : i32
    return %c0_i32, %c0_i32_0 : i32, i32
  }
  func.func @transform_3(%arg0: i32) -> (i32, i32) {
    %c0_i32 = arith.constant 0 : i32
    %c0_i32_0 = arith.constant 0 : i32
    %c0_i32_1 = arith.constant 0 : i32
    return %c0_i32, %c0_i32_0 : i32, i32
  }
  func.func @transform_4(%arg0: i32) -> (i32, i32) {
    %c0_i32 = arith.constant 0 : i32
    %c0_i32_0 = arith.constant 0 : i32
    %c0_i32_1 = arith.constant 0 : i32
    return %c0_i32, %c0_i32_0 : i32, i32
  }
  func.func @transform_5(%arg0: i32) -> (i32, i32, i32) {
    %c0_i32 = arith.constant 0 : i32
    %c0_i32_0 = arith.constant 0 : i32
    %c0_i32_1 = arith.constant 0 : i32
    return %arg0, %c0_i32, %c0_i32_0 : i32, i32, i32
  }
}

</mosaic_0001>

<bundles_post_ra>
// kernel: tpu_custom_call.1
= control target key start
LH: loop header
LB: loop body
LE: loop exit
PB: predicated region body
PF: predicated region fallthrough
CT: control target
= control target key end

     0   :  { %10 = vsyncpa [#allocation3], 0  ;;  %s1835_s0 = inlined_call_operand.hbm [shape: f32[1,4,512], index: 0, kind: input, shape index: {}]   ;;  %s1836_s1 = inlined_call_operand.hbm [shape: f32[4,3], index: 1, kind: input, shape index: {}]   ;;  %s1837_s2 = inlined_call_operand.hbm [shape: f32[36,512], index: 2, kind: input, shape index: {}]   ;;  %s1838_s3 = inlined_call_operand.hbm [shape: f32[4,36], index: 3, kind: input, shape index: {}]   ;;  %s1839_s4 = inlined_call_operand.hbm [shape: f32[4,36], index: 4, kind: input, shape index: {}]   ;;  %s1840_s5 = inlined_call_operand.hbm [shape: f32[1,4,512], index: 5, kind: output, shape index: {}]  }
   0x1   :  { %11 = vsyncpa [#allocation6], 0 }
   0x2   :  { %12 = vsyncpa [#allocation9], 0  ;;  %s30_s20 = sshll.u32 %s1836_s1, 4  ;;  %s31_s20 = int_to_ptr.hbm [resolvable:$true] %s30_s20 }
   0x3   :  { %13 = vsyncpa [#allocation4], 0  ;;  %s1130_s21 = smov [#allocation5]   ;;  %s54_s25 = sshll.u32 %s1838_s3, 4  ;;  %s55_s25 = int_to_ptr.hbm [resolvable:$true] %s54_s25 }
   0x4   :  { %s32_s22 = sshll.u32 %s1130_s21, 4  ;;  %s1131_s26 = smov [#allocation8]   ;;  %s33_s22 = int_to_ptr.vmem [resolvable:$true] %s32_s22 }
   0x5   :  { %35 = dma.hbm_to_vmem [thread:$0]  %s31_s20, 64, %s33_s22, [#allocation6]  }
   0x6   :  { %s56_s27 = sshll.u32 %s1131_s26, 4  ;;  %s19_s30 = sshll.u32 %s1835_s0, 4  ;;  %s57_s27 = int_to_ptr.vmem [resolvable:$true] %s56_s27  ;;  %s20_s30 = int_to_ptr.hbm [resolvable:$true] %s19_s30 }
   0x7   :  { %59 = dma.hbm_to_vmem [thread:$0]  %s55_s25, 64, %s57_s27, [#allocation9]  }
   0x8   :  { %s40_s7 = sshll.u32 %s1837_s2, 4  ;;  %s1132_s8 = smov [#allocation2]   ;;  %s41_s7 = int_to_ptr.hbm [resolvable:$true] %s40_s7 }
   0x9   :  { %s21_s9 = sshll.u32 %s1132_s8, 4  ;;  %s1133_s3 = smov [#allocation7]   ;;  %s22_s9 = int_to_ptr.vmem [resolvable:$true] %s21_s9 }
   0xa   :  { %24 = dma.hbm_to_vmem [thread:$0]  %s20_s30, 256, %s22_s9, [#allocation3]  }
   0xb   :  { %s42_s10 = sshll.u32 %s1133_s3, 4  ;;  %s1134_s11 = smov 512   ;;  %s43_s10 = int_to_ptr.vmem [resolvable:$true] %s42_s10 }
   0xc   :  { %s1135_s12 = smov 32   ;;  %s65_s14 = sshll.u32 %s1839_s4, 4  ;;  %s66_s14 = int_to_ptr.hbm [resolvable:$true] %s65_s14 }
   0xd   :  { %48 = dma.hbm_to_vmem [thread:$0]  %s41_s7, 2560, %s43_s10, [#allocation6], %s1134_s11, %s1134_s11, %s1135_s12  }
   0xe   :  { %s1136_s15 = smov [#allocation10]  }
   0xf   :  { %s67_s16 = sshll.u32 %s1136_s15, 4  ;;  %s68_s16 = int_to_ptr.vmem [resolvable:$true] %s67_s16 }
  0x10   :  { %70 = dma.hbm_to_vmem [thread:$0]  %s66_s14, 64, %s68_s16, [#allocation9]  }
  0x11   :  { %1122 = dma.done.wait [#allocation3], 256  }
  0x12   :  { %1123 = vsyncadd [#allocation3], 4294967040 }
  0x13   :  { %1124 = dma.done.wait [#allocation6], 2624  }
  0x14   :  { %1125 = vsyncadd [#allocation6], 4294964672 }
  0x15   :  { %1126 = dma.done.wait [#allocation9], 128  }
  0x16   :  { %1127 = vsyncadd [#allocation9], 4294967168  ;;  %v1137_v0 = vmov 0   ;;  %v1195_v1 = vld [vmem:[#allocation5] sm:$0xf]  ;;  %v1138_v2 = vmov 1   ;;  %v138_v56 = vlaneseq }
  0x17   :  { %974 = vset.pattern.permute.xlu0 %v1137_v0  ;;  %v1139_v3 = vmov 839922192   ;;  %v1199_v8 = vld [vmem:[#allocation2] sm:$0xff]  ;;  %v1201_v9 = vld [vmem:[#allocation2 + $0x8] sm:$0xff]  ;;  %s1140_s2 = smov 17   ;;  %s1141_s4 = smov 16  }
  0x18   :  { %96 = vperm.xlu0 %974, %v1195_v1   ;;  %v99_v4 = vunpack.c.l.s4 %v1139_v3  ;;  %s1142_s17 = smov 15   ;;  %s1143_s18 = smov 1   ;;  %v1287_v59 = vld [vmem:[#allocation7 + $0x18] sm:$0xf0]  ;;  %v1289_v60 = vand.u32 127, %v138_v56  ;;  %vm484_vm2 = vcmask 1043456  }
  0x19   :  { %s1144_s19 = smov 127   ;;  %s1145_s20 = smov 113   ;;  %v1841_v62 = vrot.slane %v1287_v59, 4  ;;  %vm506_vm9 = vcmask 293888  }
  0x1a   :  { %v100_v6 = vunpack.c.0.s8 %v99_v4  ;;  %s1146_s21 = smov 112   ;;  %s1147_s22 = smov 111   ;;  %vm140_vm0 = vcmp.lt.s32.totalorder %v1289_v60, 17  ;;  %vm172_vm1 = vcmp.lt.s32.totalorder %v1289_v60, 16  ;;  %vm412_vm3 = vcmp.lt.s32.totalorder %v1289_v60, 111 }
  0x1b   :  { %vm292_vm4 = vcmp.lt.s32.totalorder %v1289_v60, 127  ;;  %vm248_vm5 = vcmp.lt.s32.totalorder %v1289_v60, 1  ;;  %vm368_vm6 = vcmp.lt.s32.totalorder %v1289_v60, 112  ;;  %vm216_vm7 = vcmp.lt.s32.totalorder %v1289_v60, 15  ;;  %s1149_s23 = smov [#allocation11]   ;;  %s926_s27 = sshll.u32 %s1840_s5, 4  ;;  %s927_s27 = int_to_ptr.hbm [resolvable:$true] %s926_s27 }
  0x1c   :  { %vm336_vm8 = vcmp.lt.s32.totalorder %v1289_v60, 113  ;;  %s924_s24 = sshll.u32 %s1149_s23, 4  ;;  %s925_s24 = int_to_ptr.vmem [resolvable:$true] %s924_s24 }
  0x20   :  { %975 = vset.pattern.permute.xlu0 %v1138_v2  ;;  %v1300_v2 = vld [vmem:[#allocation7 + $0x18] sm:$0xf] }
  0x21   :  { %106 = vperm.xlu0 %975, %v1195_v1   ;;  %1851 = vst [vmem:[#allocation16_spill] sm:$0xff] %v1300_v2 }
  0x8a   :  { %v97_v5 = vpop.permute.xlu0 %96 }
  0x8b   :  { %v101_v7 = vperm.slane %v97_v5, %v100_v6 }
  0x8d   :  { %v103_v11 = vmul.f32 %v101_v7, %v1199_v8  ;;  %v104_v12 = vmul.f32 %v101_v7, %v1201_v9 }
  0x93   :  { %v107_v10 = vpop.permute.xlu0 %106 }
  0x94   :  { %v111_v13 = vperm.slane %v107_v10, %v100_v6 }
  0x96   :  { %v113_v14 = vadd.f32 %v111_v13, %v103_v11  ;;  %v114_v15 = vadd.f32 %v111_v13, %v104_v12 }
  0x98   :  { %v1205_v16 = vmax.f32 %v113_v14, 0.0  ;;  %v1207_v17 = vmax.f32 %v114_v15, 0.0 }
  0x9a   :  { %119 = vst [vmem:[#allocation1] ss:$2 sm:$0xff] %v1205_v16 }
  0x9b   :  { %121 = vst [vmem:[#allocation1 + $0x10] ss:$2 sm:$0xff] %v1207_v17 }
  0xa1   :  { %v1211_v18 = vld.sshfl [vmem:[#allocation1] sm:$0xff pattern:$0x75316420]  ;;  %v1213_v19 = vld.sshfl [vmem:[#allocation1 + $0x8] sm:$0xff pattern:$0x75316420] }
  0xa2   :  { %153 = vst [vmem:[#allocation1] ss:$2 sm:$0xff] %v1205_v16  ;;  %v125_v20 = vld.sshfl [vmem:[#allocation1 + $0x18] sm:$0xff pattern:$0x75316420] }
  0xa3   :  { %136 = vrot.lane.b32.xlu1 %v125_v20, %s1140_s2  ;;  %v124_v21 = vld.sshfl [vmem:[#allocation1 + $0x10] sm:$0xff pattern:$0x75316420] }
  0xa4   :  { %134 = vrot.lane.b32.xlu0 %v124_v21, %s1140_s2  ;;  %155 = vst [vmem:[#allocation1 + $0x10] ss:$2 sm:$0xff] %v1207_v17  ;;  %v1332_v20 = vld [vmem:[#allocation7 + $0x98] sm:$0xf] }
  0xa9   :  { %v157_v22 = vld.sshfl [vmem:[#allocation1 + $0x8] sm:$0xff pattern:$0x75316420]  ;;  %v1219_v23 = vld.sshfl [vmem:[#allocation1] sm:$0xff pattern:$0x75316420] }
  0xaa   :  { %197 = vst [vmem:[#allocation1] ss:$2 sm:$0xff] %v1205_v16 }
  0xab   :  { %v159_v24 = vld.sshfl [vmem:[#allocation1 + $0x18] sm:$0xff pattern:$0x75316420]  ;;  %v158_v25 = vld.sshfl [vmem:[#allocation1 + $0x10] sm:$0xff pattern:$0x75316420] }
  0xac   :  { %170 = vrot.lane.b32.xlu0 %v159_v24, %s1141_s4  ;;  %168 = vrot.lane.b32.xlu2 %v158_v25, %s1141_s4  ;;  %199 = vst [vmem:[#allocation1 + $0x10] ss:$2 sm:$0xff] %v1207_v17 }
  0xb1   :  { %v201_v26 = vld.sshfl [vmem:[#allocation1 + $0x8] sm:$0xff pattern:$0x75316420]  ;;  %v1225_v27 = vld.sshfl [vmem:[#allocation1] sm:$0xff pattern:$0x75316420] }
  0xb2   :  { %229 = vst [vmem:[#allocation1] ss:$2 sm:$0xff] %v1205_v16 }
  0xb3   :  { %v202_v28 = vld.sshfl [vmem:[#allocation1 + $0x10] sm:$0xff pattern:$0x75316420]  ;;  %v203_v29 = vld.sshfl [vmem:[#allocation1 + $0x18] sm:$0xff pattern:$0x75316420] }
  0xb4   :  { %212 = vrot.lane.b32.xlu1 %v202_v28, %s1142_s17  ;;  %231 = vst [vmem:[#allocation1 + $0x10] ss:$2 sm:$0xff] %v1207_v17  ;;  %166 = vrot.lane.b32.xlu2 %v157_v22, %s1141_s4 }
  0xb5   :  { %210 = vrot.lane.b32.xlu0 %v201_v26, %s1142_s17  ;;  %v1342_v26 = vld [vmem:[#allocation7 + $0x10] sm:$0xf0] }
  0xb9   :  { %v232_v30 = vld.sshfl [vmem:[#allocation1] sm:$0xff pattern:$0x75316420]  ;;  %v233_v31 = vld.sshfl [vmem:[#allocation1 + $0x8] sm:$0xff pattern:$0x75316420] }
  0xba   :  { %273 = vst [vmem:[#allocation1] ss:$2 sm:$0xff] %v1205_v16 }
  0xbb   :  { %v234_v32 = vld.sshfl [vmem:[#allocation1 + $0x10] sm:$0xff pattern:$0x75316420]  ;;  %v235_v33 = vld.sshfl [vmem:[#allocation1 + $0x18] sm:$0xff pattern:$0x75316420] }
  0xbc   :  { %244 = vrot.lane.b32.xlu1 %v234_v32, %s1143_s18  ;;  %214 = vrot.lane.b32.xlu2 %v203_v29, %s1142_s17  ;;  %275 = vst [vmem:[#allocation1 + $0x10] ss:$2 sm:$0xff] %v1207_v17  ;;  %v1346_v29 = vld [vmem:[#allocation7 + $0x80] sm:$0xf] }
  0xbd   :  { %242 = vrot.lane.b32.xlu0 %v233_v31, %s1143_s18  ;;  %v1350_v31 = vld [vmem:[#allocation7 + $0x90] sm:$0xf] }
  0xc1   :  { %v276_v34 = vld.sshfl [vmem:[#allocation1] sm:$0xff pattern:$0x75316420]  ;;  %v277_v35 = vld.sshfl [vmem:[#allocation1 + $0x8] sm:$0xff pattern:$0x75316420] }
  0xc2   :  { %317 = vst [vmem:[#allocation1] ss:$2 sm:$0xff] %v1205_v16 }
  0xc3   :  { %v278_v36 = vld.sshfl [vmem:[#allocation1 + $0x10] sm:$0xff pattern:$0x75316420]  ;;  %v279_v37 = vld.sshfl [vmem:[#allocation1 + $0x18] sm:$0xff pattern:$0x75316420] }
  0xc4   :  { %246 = vrot.lane.b32.xlu2 %v235_v33, %s1143_s18  ;;  %284 = vrot.lane.b32.xlu1 %v276_v34, %s1144_s19  ;;  %319 = vst [vmem:[#allocation1 + $0x10] ss:$2 sm:$0xff] %v1207_v17  ;;  %v1842_v34 = vrot.slane %v1342_v26, 4 }
  0xc5   :  { %288 = vrot.lane.b32.xlu0 %v278_v36, %s1144_s19 }
  0xc9   :  { %v320_v38 = vld.sshfl [vmem:[#allocation1] sm:$0xff pattern:$0x75316420]  ;;  %v321_v39 = vld.sshfl [vmem:[#allocation1 + $0x8] sm:$0xff pattern:$0x75316420] }
  0xca   :  { %349 = vst [vmem:[#allocation1] ss:$2 sm:$0xff] %v1205_v16 }
  0xcb   :  { %v323_v40 = vld.sshfl [vmem:[#allocation1 + $0x18] sm:$0xff pattern:$0x75316420]  ;;  %v322_v41 = vld.sshfl [vmem:[#allocation1 + $0x10] sm:$0xff pattern:$0x75316420] }
  0xcc   :  { %290 = vrot.lane.b32.xlu2 %v279_v37, %s1144_s19  ;;  %286 = vrot.lane.b32.xlu1 %v277_v35, %s1144_s19  ;;  %351 = vst [vmem:[#allocation1 + $0x10] ss:$2 sm:$0xff] %v1207_v17 }
  0xcd   :  { %328 = vrot.lane.b32.xlu0 %v320_v38, %s1145_s20 }
  0xd1   :  { %v352_v42 = vld.sshfl [vmem:[#allocation1] sm:$0xff pattern:$0x75316420]  ;;  %v353_v43 = vld.sshfl [vmem:[#allocation1 + $0x8] sm:$0xff pattern:$0x75316420] }
  0xd2   :  { %393 = vst [vmem:[#allocation1] ss:$2 sm:$0xff] %v1205_v16 }
  0xd3   :  { %v355_v44 = vld.sshfl [vmem:[#allocation1 + $0x18] sm:$0xff pattern:$0x75316420]  ;;  %v354_v45 = vld.sshfl [vmem:[#allocation1 + $0x10] sm:$0xff pattern:$0x75316420] }
  0xd4   :  { %334 = vrot.lane.b32.xlu1 %v323_v40, %s1145_s20  ;;  %330 = vrot.lane.b32.xlu2 %v321_v39, %s1145_s20  ;;  %395 = vst [vmem:[#allocation1 + $0x10] ss:$2 sm:$0xff] %v1207_v17 }
  0xd9   :  { %v396_v46 = vld.sshfl [vmem:[#allocation1] sm:$0xff pattern:$0x75316420]  ;;  %v397_v47 = vld.sshfl [vmem:[#allocation1 + $0x8] sm:$0xff pattern:$0x75316420] }
  0xda   :  { %449 = vst [vmem:[#allocation1] ss:$2 sm:$0xff] %v1205_v16 }
  0xdb   :  { %v398_v48 = vld.sshfl [vmem:[#allocation1 + $0x10] sm:$0xff pattern:$0x75316420]  ;;  %v399_v49 = vld.sshfl [vmem:[#allocation1 + $0x18] sm:$0xff pattern:$0x75316420] }
  0xdc   :  { %332 = vrot.lane.b32.xlu1 %v322_v41, %s1145_s20  ;;  %364 = vrot.lane.b32.xlu2 %v354_v45, %s1146_s21  ;;  %451 = vst [vmem:[#allocation1 + $0x10] ss:$2 sm:$0xff] %v1207_v17 }
  0xdd   :  { %408 = vrot.lane.b32.xlu0 %v398_v48, %s1147_s22 }
  0xe1   :  { %v1256_v50 = vld.sshfl [vmem:[#allocation1] sm:$0xff pattern:$0x75316420]  ;;  %v1258_v51 = vld.sshfl [vmem:[#allocation1 + $0x8] sm:$0xff pattern:$0x75316420] }
  0xe2   :  { %801 = vst [vmem:[#allocation1] ss:$2 sm:$0xff] %v1199_v8 }
  0xe3   :  { %v1261_v52 = vld.sshfl [vmem:[#allocation1 + $0x10] sm:$0xff pattern:$0x75316420]  ;;  %v1263_v53 = vld.sshfl [vmem:[#allocation1 + $0x18] sm:$0xff pattern:$0x75316420] }
  0xe4   :  { %360 = vrot.lane.b32.xlu1 %v352_v42, %s1146_s21  ;;  %404 = vrot.lane.b32.xlu2 %v396_v46, %s1147_s22  ;;  %803 = vst [vmem:[#allocation1 + $0x10] ss:$2 sm:$0xff] %v1201_v9  ;;  %v1370_v42 = vld [vmem:[#allocation7 + $0x50] sm:$0xf0]  ;;  %v1378_v46 = vld [vmem:[#allocation7 + $0x38] sm:$0xf0] }
  0xe5   :  { %132 = vrot.lane.b32.xlu0 %v1213_v19, %s1140_s2  ;;  %v1845_v56 = vrot.slane %v1370_v42, 4 }
  0xec   :  { %366 = vrot.lane.b32.xlu1 %v355_v44, %s1146_s21  ;;  %410 = vrot.lane.b32.xlu2 %v399_v49, %s1147_s22  ;;  %v1374_v44 = vld [vmem:[#allocation7 + $0x10] sm:$0xf] }
  0xed   :  { %208 = vrot.lane.b32.xlu0 %v1225_v27, %s1142_s17  ;;  %1852 = vst [vmem:[#allocation17_spill] sm:$0xff] %v1374_v44 }
  0xf4   :  { %362 = vrot.lane.b32.xlu1 %v353_v43, %s1146_s21  ;;  %406 = vrot.lane.b32.xlu2 %v397_v47, %s1147_s22  ;;  %v1372_v43 = vld [vmem:[#allocation7 + $0x58] sm:$0xf0]  ;;  %v1380_v47 = vld [vmem:[#allocation7 + $0x30] sm:$0xf0] }
  0xfc   :  { %240 = vrot.lane.b32.xlu1 %v232_v30, %s1143_s18  ;;  %164 = vrot.lane.b32.xlu2 %v1219_v23, %s1141_s4  ;;  %v1348_v30 = vld [vmem:[#allocation7 + $0x88] sm:$0xf] }
 0x104   :  { %130 = vrot.lane.b32.xlu1 %v1211_v18, %s1140_s2 }
 0x106   :  { %v169_v54 = vpop.permute.xlu2 %168 }
 0x10e   :  { %v1281_v55 = vpop.permute.xlu2 %166 }
 0x10f   :  { %v174_v37 = vsel %vm172_vm1, %v1281_v55, %v169_v54 }
 0x110   :  { %v195_v41 = vmul.f32 %v1842_v34, %v174_v37  ;;  %v1148_v37 = vmov 2  }
 0x111   :  { %976 = vset.pattern.permute.xlu2 %v1148_v37  ;;  %977 = vset.pattern.permute.xlu0 %v1148_v37 }
 0x112   :  { %v431_v49 = vrot.slane %v195_v41, 4  ;;  %503 = vperm.xlu2 %976, %v1195_v1  }
 0x115   :  { %v1291_v61 = vpop.permute.xlu1 %136 }
 0x116   :  { %v1283_v57 = vpop.permute.xlu0 %134  ;;  %v1285_v58 = vpop.permute.xlu2 %214 }
 0x117   :  { %v141_v3 = vsel %vm140_vm0, %v1283_v57, %v1291_v61 }
 0x118   :  { %v152_v6 = vmul.f32 %v1300_v2, %v141_v3  ;;  %v1847_v3 = vrot.slane %v1372_v43, 4 }
 0x11e   :  { %v1296_v63 = vpop.permute.xlu0 %170  ;;  %v1298_v0 = vpop.permute.xlu2 %246 }
 0x11f   :  { %v173_v4 = vsel %vm172_vm1, %v169_v54, %v1296_v63 }
 0x120   :  { %v196_v5 = vmul.f32 %v1841_v62, %v173_v4 }
 0x122   :  { %v432_v7 = vrot.slane %v196_v5, 4  ;;  %v1393_v5 = vld [vmem:[#allocation7 + $0x70] sm:$0xf0] }
 0x124   :  { %v1313_v8 = vsel %vm484_vm2, %v152_v6, %v432_v7  ;;  %v1395_v6 = vld [vmem:[#allocation7 + $0x78] sm:$0xf0]  ;;  %v1843_v7 = vrot.slane %v1378_v46, 4 }
 0x126   :  { %v1315_v9 = vpop.permute.xlu1 %212  ;;  %v291_v10 = vpop.permute.xlu2 %290 }
 0x127   :  { %v1317_v11 = vpop.permute.xlu0 %210 }
 0x128   :  { %v218_v62 = vsel %vm216_vm7, %v1317_v11, %v1315_v9 }
 0x12e   :  { %v245_v12 = vpop.permute.xlu1 %244  ;;  %v1319_v13 = vpop.permute.xlu2 %330 }
 0x12f   :  { %v1321_v14 = vpop.permute.xlu0 %242 }
 0x136   :  { %v1323_v15 = vpop.permute.xlu1 %284  ;;  %v1325_v16 = vpop.permute.xlu2 %364 }
 0x137   :  { %v1327_v17 = vpop.permute.xlu0 %288 }
 0x13e   :  { %v1329_v18 = vpop.permute.xlu1 %286  ;;  %v405_v19 = vpop.permute.xlu2 %404 }
 0x13f   :  { %v1336_v23 = vpop.permute.xlu0 %328 }
 0x146   :  { %v1334_v21 = vpop.permute.xlu1 %334  ;;  %v411_v22 = vpop.permute.xlu2 %410 }
 0x147   :  { %v416_v24 = vsel %vm412_vm3, %v411_v22, %v405_v19 }
 0x148   :  { %v424_v25 = vmul.f32 %v1332_v20, %v416_v24  ;;  %v249_v24 = vsel %vm248_vm5, %v245_v12, %v1298_v0 }
 0x14a   :  { %944 = vmatpush.msk.msra.mxu3 %vm484_vm2, %v424_v25  ;;  %v250_v25 = vsel %vm248_vm5, %v1321_v14, %v245_v12  ;;  %v1424_v12 = vld [vmem:[#allocation7 + $0x48] sm:$0xf0] }
 0x14e   :  { %v1344_v27 = vpop.permute.xlu1 %332  ;;  %v407_v28 = vpop.permute.xlu2 %406 }
 0x14f   :  { %v409_v32 = vpop.permute.xlu0 %408  ;;  %v415_v33 = vsel %vm412_vm3, %v405_v19, %v407_v28  ;;  %v1844_v19 = vrot.slane %v1380_v47, 4 }
 0x150   :  { %v413_v35 = vsel %vm412_vm3, %v409_v32, %v411_v22  ;;  %v414_v36 = vsel %vm412_vm3, %v407_v28, %v409_v32  ;;  %v421_v38 = vmul.f32 %v1346_v29, %v415_v33  ;;  %v293_v22 = vsel %vm292_vm4, %v1327_v17, %v291_v10  ;;  %v1411_v28 = vld [vmem:[#allocation7 + $0x40] sm:$0xf0] }
 0x151   :  { %v422_v39 = vmul.f32 %v1348_v30, %v414_v36  ;;  %v423_v40 = vmul.f32 %v1350_v31, %v413_v35  ;;  %v1846_v33 = vrot.slane %v1393_v5, 4  ;;  %v1848_v35 = vrot.slane %v1395_v6, 4 }
 0x152   :  { %938 = vmatpush.msk.msra.mxu0 %vm484_vm2, %v421_v38  ;;  %v272_v38 = vmul.f32 %v1843_v7, %v249_v24  ;;  %v217_v24 = vsel %vm216_vm7, %v1315_v9, %v1285_v58  ;;  %v295_v7 = vsel %vm292_vm4, %v1323_v15, %v1329_v18 }
 0x153   :  { %940 = vmatpush.msk.msra.mxu1 %vm484_vm2, %v422_v39  ;;  %942 = vmatpush.msk.msra.mxu2 %vm484_vm2, %v423_v40  ;;  %v271_v39 = vmul.f32 %v1844_v19, %v250_v25  ;;  %v1468_v19 = vld [vmem:[#allocation7 + $0x60] sm:$0xf0] }
 0x154   :  { %v381_v2 = vrot.slane %v1468_v19, 4 }
 0x156   :  { %v1376_v45 = vpop.permute.xlu1 %360 }
 0x157   :  { %v1383_v48 = vpop.permute.xlu0 %132 }
 0x158   :  { %v142_v54 = vsel %vm140_vm0, %v1383_v48, %v1283_v57  ;;  %v296_v57 = vsel %vm292_vm4, %v291_v10, %v1323_v15  ;;  %v315_v10 = vmul.f32 %v1845_v56, %v293_v22  ;;  %v337_v22 = vsel %vm336_vm8, %v1344_v27, %v1334_v21  ;;  %v1470_v56 = vld [vmem:[#allocation7 + $0x68] sm:$0xf0] }
 0x159   :  { %v151_v4 = vmul.f32 %v1374_v44, %v142_v54  ;;  %v316_v36 = vmul.f32 %v1847_v3, %v296_v57  ;;  %v340_v54 = vsel %vm336_vm8, %v1334_v21, %v1336_v23  ;;  %v294_v15 = vsel %vm292_vm4, %v1329_v18, %v1327_v17  ;;  %v1492_v18 = vld [vmem:[#allocation7 + $0x60] sm:$0xf] }
 0x15a   :  { %v466_v34 = vrot.slane %v315_v10, 4  ;;  %v382_v44 = vrot.slane %v1470_v56, 4 }
 0x15b   :  { %v1414_v32 = vsel %vm484_vm2, %v151_v4, %v431_v49  ;;  %v1433_v49 = vld [vmem:[#allocation7 + $0x78] sm:$0xf]  ;;  %v1439_v4 = vld [vmem:[#allocation7 + $0x70] sm:$0xf] }
 0x15c   :  { %v347_v3 = vmul.f32 %v1439_v4, %v337_v22 }
 0x15e   :  { %v367_v41 = vpop.permute.xlu1 %366 }
 0x15f   :  { %v369_v57 = vsel %vm368_vm6, %v1325_v16, %v367_v41  ;;  %v372_v1 = vsel %vm368_vm6, %v367_v41, %v1376_v45  ;;  %v467_v41 = vrot.slane %v316_v36, 4  ;;  %v444_v36 = vrot.slane %v272_v38, 4 }
 0x160   :  { %v391_v37 = vmul.f32 %v1846_v33, %v369_v57  ;;  %v392_v21 = vmul.f32 %v1848_v35, %v372_v1  ;;  %v1472_v57 = vld [vmem:[#allocation7 + $0x38] sm:$0xf]  ;;  %v1474_v33 = vld [vmem:[#allocation7 + $0x30] sm:$0xf]  ;;  %v348_v1 = vmul.f32 %v1433_v49, %v340_v54  ;;  %v443_v35 = vrot.slane %v271_v39, 4 }
 0x161   :  { %v228_v54 = vmul.f32 %v1472_v57, %v217_v24  ;;  %v227_v22 = vmul.f32 %v1474_v33, %v218_v62  ;;  %v1853_v38 = vrot.slane %v1411_v28, 4  ;;  %v495_v24 = vsel %vm484_vm2, %v1261_v52, %v466_v34 }
 0x162   :  { %v478_v9 = vrot.slane %v391_v37, 4  ;;  %v479_v10 = vrot.slane %v392_v21, 4  ;;  %v1854_v37 = vrot.slane %v1424_v12, 4  ;;  %v496_v62 = vsel %vm484_vm2, %v1263_v53, %v467_v41 }
 0x163   :  { %v313_v39 = vmul.f32 %v1853_v38, %v295_v7  ;;  %v1502_v7 = vld [vmem:[#allocation7 + $0x68] sm:$0xf]  ;;  %v491_v34 = vsel %vm484_vm2, %v227_v22, %v443_v35 }
 0x164   :  { %v499_v25 = vsel %vm484_vm2, %v347_v3, %v478_v9  ;;  %v500_v40 = vsel %vm484_vm2, %v348_v1, %v479_v10  ;;  %v314_v17 = vmul.f32 %v1854_v37, %v294_v15  ;;  %v339_v3 = vsel %vm336_vm8, %v1336_v23, %v1319_v13  ;;  %v501_v1 = vld [vmem:[#allocation8] sm:$0xf]  ;;  %v209_v37 = vpop.permute.xlu0 %208 }
 0x165   :  { %574 = vmatpush.msra.mxu2 %v499_v25  ;;  %594 = vmatpush.msra.mxu3 %v500_v40  ;;  %v338_v40 = vsel %vm336_vm8, %v1319_v13, %v1344_v27  ;;  %v492_v13 = vsel %vm484_vm2, %v228_v54, %v444_v36  ;;  %v1520_v27 = vld [vmem:[#allocation7 + $0x20] sm:$0xf0]  ;;  %v464_v41 = vrot.slane %v313_v39, 4 }
 0x166   :  { %v363_v21 = vpop.permute.xlu1 %362  ;;  %v465_v9 = vrot.slane %v314_v17, 4  ;;  %v346_v10 = vmul.f32 %v1502_v7, %v338_v40  ;;  %v261_v54 = vrot.slane %v1520_v27, 4  ;;  %v1534_v39 = vld [vmem:[#allocation7] sm:$0xf0]  ;;  %v1536_v17 = vld [vmem:[#allocation7 + $0x8] sm:$0xf0] }
 0x167   :  { %v370_v25 = vsel %vm368_vm6, %v363_v21, %v1325_v16  ;;  %v371_v23 = vsel %vm368_vm6, %v1376_v45, %v363_v21  ;;  %575 = vmatpush.msra.mxu2 %v495_v24  ;;  %595 = vmatpush.msra.mxu3 %v496_v62  ;;  %v345_v16 = vmul.f32 %v1492_v18, %v339_v3  ;;  %v1523_v45 = vld [vmem:[#allocation7 + $0x28] sm:$0xf0]  ;;  %v1545_v62 = vld [vmem:[#allocation7 + $0x20] sm:$0xf]  ;;  %v1547_v40 = vld [vmem:[#allocation7 + $0x28] sm:$0xf] }
 0x168   :  { %v389_v52 = vmul.f32 %v381_v2, %v371_v23  ;;  %v390_v53 = vmul.f32 %v382_v44, %v370_v25  ;;  %v262_v22 = vrot.slane %v1523_v45, 4  ;;  %v493_v21 = vsel %vm484_vm2, %v1256_v50, %v464_v41 }
 0x169   :  { %576 = vmatpush.msra.mxu2 %v491_v34  ;;  %596 = vmatpush.msra.mxu3 %v492_v13  ;;  %v494_v24 = vsel %vm484_vm2, %v1258_v51, %v465_v9  ;;  %v220_v25 = vsel %vm216_vm7, %v1285_v58, %v209_v37  ;;  %v185_v50 = vrot.slane %v1534_v39, 4  ;;  %v186_v51 = vrot.slane %v1536_v17, 4 }
 0x16a   :  { %v476_v15 = vrot.slane %v389_v52, 4  ;;  %v477_v38 = vrot.slane %v390_v53, 4  ;;  %v225_v53 = vmul.f32 %v1545_v62, %v220_v25 }
 0x16b   :  { %577 = vmatpush.msra.mxu2 %v1414_v32  ;;  %597 = vmatpush.msra.mxu3 %v1313_v8  ;;  %v165_v32 = vpop.permute.xlu2 %164  ;;  %v219_v8 = vsel %vm216_vm7, %v209_v37, %v1317_v11 }
 0x16c   :  { %v497_v35 = vsel %vm484_vm2, %v345_v16, %v476_v15  ;;  %v498_v36 = vsel %vm484_vm2, %v346_v10, %v477_v38  ;;  %943 = vmatmul.msk.f32.vlgmr.msra.gmra.mxu2 %vm506_vm9, %v501_v1  ;;  %945 = vmatmul.msk.f32.vlgmr.msra.gmra.mxu3 %vm506_vm9, %v501_v1  ;;  %v226_v34 = vmul.f32 %v1547_v40, %v219_v8  ;;  %v1578_v15 = vld [vmem:[#allocation7] sm:$0xf] }
 0x16d   :  { %534 = vmatpush.msra.mxu0 %v497_v35  ;;  %554 = vmatpush.msra.mxu1 %v498_v36 }
 0x16e   :  { %v241_v3 = vpop.permute.xlu1 %240 }
 0x16f   :  { %v251_v23 = vsel %vm248_vm5, %v241_v3, %v1321_v14  ;;  %v252_v11 = vsel %vm248_vm5, %v1298_v0, %v241_v3  ;;  %535 = vmatpush.msra.mxu0 %v493_v21  ;;  %555 = vmatpush.msra.mxu1 %v494_v24  ;;  %v175_v14 = vsel %vm172_vm1, %v165_v32, %v1281_v55 }
 0x170   :  { %v269_v52 = vmul.f32 %v261_v54, %v252_v11  ;;  %v270_v58 = vmul.f32 %v262_v22, %v251_v23  ;;  %v176_v0 = vsel %vm172_vm1, %v1296_v63, %v165_v32  ;;  %v194_v9 = vmul.f32 %v186_v51, %v175_v14  ;;  %v1580_v63 = vld [vmem:[#allocation7 + $0x8] sm:$0xf] }
 0x171   :  { %v193_v16 = vmul.f32 %v185_v50, %v176_v0 }
 0x172   :  { %v441_v13 = vrot.slane %v269_v52, 4  ;;  %v442_v41 = vrot.slane %v270_v58, 4  ;;  %v430_v32 = vrot.slane %v194_v9, 4 }
 0x173   :  { %v429_v36 = vrot.slane %v193_v16, 4 }
 0x174   :  { %v489_v10 = vsel %vm484_vm2, %v225_v53, %v441_v13  ;;  %v490_v55 = vsel %vm484_vm2, %v226_v34, %v442_v41 }
 0x175   :  { %536 = vmatpush.msra.mxu0 %v489_v10  ;;  %556 = vmatpush.msra.mxu1 %v490_v55 }
 0x176   :  { %v131_v38 = vpop.permute.xlu1 %130 }
 0x177   :  { %v143_v37 = vsel %vm140_vm0, %v131_v38, %v1383_v48  ;;  %v144_v35 = vsel %vm140_vm0, %v1291_v61, %v131_v38  ;;  %v504_v48 = vpop.permute.xlu2 %503 }
 0x178   :  { %v149_v8 = vmul.f32 %v1578_v15, %v144_v35  ;;  %v150_v3 = vmul.f32 %v1580_v63, %v143_v37 }
 0x17a   :  { %v485_v21 = vsel %vm484_vm2, %v149_v8, %v429_v36  ;;  %v486_v24 = vsel %vm484_vm2, %v150_v3, %v430_v32 }
 0x17b   :  { %537 = vmatpush.msra.mxu0 %v485_v21  ;;  %557 = vmatpush.msra.mxu1 %v486_v24 }
 0x17c   :  { %939 = vmatmul.msk.f32.vlgmr.msra.gmra.mxu0 %vm506_vm9, %v501_v1  ;;  %941 = vmatmul.msk.f32.vlgmr.msra.gmra.mxu1 %vm506_vm9, %v501_v1 }
 0x1ef   :  { %v599_v1 = vpop.f32.mrf.mxu3  ;;  %v579_v53 = vpop.f32.mrf.mxu2 }
 0x1f0   :  { %v600_v14 = vadd.f32 %v599_v1, %v504_v48  ;;  %v580_v34 = vadd.f32 %v579_v53, %v504_v48 }
 0x1f2   :  { %v1622_v0 = vmax.f32 %v600_v14, 0.0  ;;  %v1630_v13 = vmax.f32 %v580_v34, 0.0 }
 0x1f9   :  { %v539_v25 = vpop.f32.mrf.mxu0  ;;  %v559_v11 = vpop.f32.mrf.mxu1 }
 0x1fa   :  { %v540_v23 = vadd.f32 %v539_v25, %v504_v48  ;;  %v560_v52 = vadd.f32 %v559_v11, %v504_v48 }
 0x1fc   :  { %v1594_v61 = vmax.f32 %v540_v23, 0.0  ;;  %v1602_v58 = vmax.f32 %v560_v52, 0.0  ;;  %v1855_v52 = vrot.slane %v1411_v28, 4 }
 0x1fe   :  { %670 = vrot.lane.b32.xlu1 %v1594_v61, %s1144_s19  ;;  %718 = vrot.lane.b32.xlu2 %v1594_v61, %s1147_s22 }
 0x1ff   :  { %702 = vrot.lane.b32.xlu0 %v1594_v61, %s1146_s21 }
 0x206   :  { %704 = vrot.lane.b32.xlu1 %v1602_v58, %s1146_s21  ;;  %720 = vrot.lane.b32.xlu2 %v1602_v58, %s1147_s22 }
 0x207   :  { %686 = vrot.lane.b32.xlu0 %v1594_v61, %s1145_s20 }
 0x20e   :  { %672 = vrot.lane.b32.xlu1 %v1602_v58, %s1144_s19  ;;  %624 = vrot.lane.b32.xlu2 %v1602_v58, %s1141_s4 }
 0x20f   :  { %656 = vrot.lane.b32.xlu0 %v1602_v58, %s1143_s18 }
 0x216   :  { %654 = vrot.lane.b32.xlu1 %v1594_v61, %s1143_s18  ;;  %688 = vrot.lane.b32.xlu2 %v1602_v58, %s1145_s20 }
 0x217   :  { %640 = vrot.lane.b32.xlu0 %v1602_v58, %s1142_s17 }
 0x21e   :  { %708 = vrot.lane.b32.xlu1 %v1622_v0, %s1146_s21  ;;  %676 = vrot.lane.b32.xlu2 %v1622_v0, %s1144_s19 }
 0x21f   :  { %608 = vrot.lane.b32.xlu0 %v1602_v58, %s1140_s2 }
 0x226   :  { %692 = vrot.lane.b32.xlu1 %v1622_v0, %s1145_s20  ;;  %706 = vrot.lane.b32.xlu2 %v1630_v13, %s1146_s21 }
 0x227   :  { %724 = vrot.lane.b32.xlu0 %v1622_v0, %s1147_s22 }
 0x22e   :  { %658 = vrot.lane.b32.xlu1 %v1630_v13, %s1143_s18  ;;  %660 = vrot.lane.b32.xlu2 %v1622_v0, %s1143_s18 }
 0x22f   :  { %722 = vrot.lane.b32.xlu0 %v1630_v13, %s1147_s22 }
 0x236   :  { %690 = vrot.lane.b32.xlu1 %v1630_v13, %s1145_s20  ;;  %626 = vrot.lane.b32.xlu2 %v1630_v13, %s1141_s4 }
 0x237   :  { %674 = vrot.lane.b32.xlu0 %v1630_v13, %s1144_s19 }
 0x23e   :  { %642 = vrot.lane.b32.xlu1 %v1630_v13, %s1142_s17  ;;  %644 = vrot.lane.b32.xlu2 %v1622_v0, %s1142_s17 }
 0x23f   :  { %628 = vrot.lane.b32.xlu0 %v1622_v0, %s1141_s4 }
 0x246   :  { %612 = vrot.lane.b32.xlu1 %v1622_v0, %s1140_s2  ;;  %622 = vrot.lane.b32.xlu2 %v1594_v61, %s1141_s4 }
 0x247   :  { %610 = vrot.lane.b32.xlu0 %v1630_v13, %s1140_s2 }
 0x24e   :  { %606 = vrot.lane.b32.xlu1 %v1594_v61, %s1140_s2 }
 0x24f   :  { %638 = vrot.lane.b32.xlu0 %v1594_v61, %s1142_s17 }
 0x258   :  { %v719_v41 = vpop.permute.xlu2 %718 }
 0x260   :  { %v721_v16 = vpop.permute.xlu2 %720 }
 0x261   :  { %v728_v9 = vsel %vm412_vm3, %v719_v41, %v721_v16 }
 0x262   :  { %v730_v10 = vmul.f32 %v728_v9, %v1346_v29 }
 0x264   :  { %946 = vmatpush.msk.msrb.mxu0 %vm484_vm2, %v730_v10 }
 0x268   :  { %v1670_v55 = vpop.permute.xlu2 %624 }
 0x270   :  { %v671_v38 = vpop.permute.xlu1 %670  ;;  %v689_v36 = vpop.permute.xlu2 %688 }
 0x271   :  { %v703_v37 = vpop.permute.xlu0 %702 }
 0x278   :  { %v705_v35 = vpop.permute.xlu1 %704  ;;  %v677_v14 = vpop.permute.xlu2 %676 }
 0x279   :  { %v712_v32 = vsel %vm368_vm6, %v703_v37, %v705_v35  ;;  %v687_v8 = vpop.permute.xlu0 %686  ;;  %v681_v28 = vsel %vm292_vm4, %v677_v14, %v671_v38 }
 0x27a   :  { %v714_v3 = vmul.f32 %v712_v32, %v381_v2  ;;  %v696_v21 = vsel %vm336_vm8, %v687_v8, %v689_v36 }
 0x27b   :  { %v698_v29 = vmul.f32 %v696_v21, %v1492_v18 }
 0x27c   :  { %v774_v24 = vrot.slane %v714_v3, 4  ;;  %v1856_v3 = vrot.slane %v1395_v6, 4 }
 0x27e   :  { %v794_v48 = vsel %vm484_vm2, %v698_v29, %v774_v24 }
 0x27f   :  { %839 = vmatpush.msrb.mxu0 %v794_v48 }
 0x280   :  { %v673_v25 = vpop.permute.xlu1 %672  ;;  %v707_v10 = vpop.permute.xlu2 %706 }
 0x281   :  { %v680_v23 = vsel %vm292_vm4, %v671_v38, %v673_v25  ;;  %v1682_v11 = vpop.permute.xlu0 %656 }
 0x282   :  { %v682_v1 = vmul.f32 %v680_v23, %v1855_v52 }
 0x284   :  { %v762_v19 = vrot.slane %v682_v1, 4 }
 0x286   :  { %v790_v2 = vsel %vm484_vm2, %v1594_v61, %v762_v19  ;;  %v1857_v61 = vrot.slane %v1372_v43, 4 }
 0x287   :  { %840 = vmatpush.msrb.mxu0 %v790_v2 }
 0x288   :  { %v1688_v53 = vpop.permute.xlu1 %654  ;;  %v685_v24 = vmul.f32 %v681_v28, %v1857_v61  ;;  %v1708_v2 = vpop.permute.xlu2 %660  ;;  %v1858_v61 = vrot.slane %v1393_v5, 4 }
 0x289   :  { %v1690_v18 = vpop.permute.xlu0 %640 }
 0x28a   :  { %v765_v38 = vrot.slane %v685_v24, 4 }
 0x290   :  { %v709_v34 = vpop.permute.xlu1 %708 }
 0x291   :  { %v1692_v9 = vpop.permute.xlu0 %608  ;;  %v713_v32 = vsel %vm368_vm6, %v709_v34, %v703_v37 }
 0x292   :  { %v717_v21 = vmul.f32 %v713_v32, %v1856_v3 }
 0x294   :  { %v777_v52 = vrot.slane %v717_v21, 4 }
 0x298   :  { %v693_v29 = vpop.permute.xlu1 %692 }
 0x299   :  { %v697_v48 = vsel %vm336_vm8, %v693_v29, %v687_v8  ;;  %v725_v23 = vpop.permute.xlu0 %724  ;;  %v793_v8 = vsel %vm484_vm2, %v1622_v0, %v765_v38  ;;  %v1861_v38 = vrot.slane %v1380_v47, 4 }
 0x29a   :  { %v701_v1 = vmul.f32 %v697_v48, %v1433_v49  ;;  %v729_v37 = vsel %vm412_vm3, %v725_v23, %v719_v41  ;;  %v711_v49 = vsel %vm368_vm6, %v705_v35, %v707_v10  ;;  %v627_v35 = vpop.permute.xlu2 %626 }
 0x29b   :  { %v733_v19 = vmul.f32 %v729_v37, %v1332_v20  ;;  %v710_v20 = vsel %vm368_vm6, %v707_v10, %v709_v34  ;;  %v715_v0 = vmul.f32 %v711_v49, %v382_v44 }
 0x29c   :  { %v797_v6 = vsel %vm484_vm2, %v701_v1, %v777_v52  ;;  %v716_v24 = vmul.f32 %v710_v20, %v1858_v61 }
 0x29d   :  { %952 = vmatpush.msk.msrb.mxu3 %vm484_vm2, %v733_v19  ;;  %v775_v10 = vrot.slane %v715_v0, 4 }
 0x29e   :  { %v776_v48 = vrot.slane %v716_v24, 4  ;;  %v1863_v24 = vrot.slane %v1342_v26, 4 }
 0x29f   :  { %899 = vmatpush.msrb.mxu3 %v797_v6 }
 0x2a0   :  { %v659_v43 = vpop.permute.xlu1 %658 }
 0x2a1   :  { %900 = vmatpush.msrb.mxu3 %v793_v8  ;;  %v723_v32 = vpop.permute.xlu0 %722  ;;  %v662_v52 = vsel %vm248_vm5, %v659_v43, %v1708_v2  ;;  %v1862_v8 = vrot.slane %v1378_v46, 4 }
 0x2a2   :  { %v726_v41 = vsel %vm412_vm3, %v723_v32, %v725_v23  ;;  %v727_v28 = vsel %vm412_vm3, %v721_v16, %v723_v32  ;;  %v645_v32 = vpop.permute.xlu2 %644 }
 0x2a3   :  { %v732_v3 = vmul.f32 %v726_v41, %v1350_v31  ;;  %v731_v21 = vmul.f32 %v727_v28, %v1348_v30 }
 0x2a5   :  { %950 = vmatpush.msk.msrb.mxu2 %vm484_vm2, %v732_v3  ;;  %948 = vmatpush.msk.msrb.mxu1 %vm484_vm2, %v731_v21 }
 0x2a8   :  { %v691_v34 = vpop.permute.xlu1 %690 }
 0x2a9   :  { %v694_v16 = vsel %vm336_vm8, %v691_v34, %v693_v29  ;;  %v695_v30 = vsel %vm336_vm8, %v689_v36, %v691_v34  ;;  %v675_v31 = vpop.permute.xlu0 %674  ;;  %v663_v29 = vsel %vm248_vm5, %v1682_v11, %v659_v43  ;;  %v1859_v36 = vrot.slane %v1424_v12, 4 }
 0x2aa   :  { %v699_v44 = vmul.f32 %v695_v30, %v1502_v7  ;;  %v700_v56 = vmul.f32 %v694_v16, %v1439_v4  ;;  %v678_v5 = vsel %vm292_vm4, %v675_v31, %v677_v14  ;;  %v679_v23 = vsel %vm292_vm4, %v673_v25, %v675_v31  ;;  %v623_v31 = vpop.permute.xlu2 %622 }
 0x2ab   :  { %v683_v1 = vmul.f32 %v679_v23, %v1859_v36  ;;  %v1860_v7 = vrot.slane %v1370_v42, 4  ;;  %v668_v6 = vmul.f32 %v663_v29, %v1861_v38  ;;  %v669_v43 = vmul.f32 %v662_v52, %v1862_v8  ;;  %v1866_v23 = vld [vmem:[#allocation16_spill] sm:$0xff] }
 0x2ac   :  { %v795_v37 = vsel %vm484_vm2, %v699_v44, %v775_v10  ;;  %v796_v14 = vsel %vm484_vm2, %v700_v56, %v776_v48  ;;  %v664_v16 = vsel %vm248_vm5, %v1688_v53, %v1682_v11  ;;  %v1865_v56 = vld [vmem:[#allocation17_spill] sm:$0xff] }
 0x2ad   :  { %v684_v4 = vmul.f32 %v678_v5, %v1860_v7  ;;  %v763_v19 = vrot.slane %v683_v1, 4  ;;  %859 = vmatpush.msrb.mxu1 %v795_v37  ;;  %879 = vmatpush.msrb.mxu2 %v796_v14  ;;  %v752_v46 = vrot.slane %v668_v6, 4  ;;  %v753_v28 = vrot.slane %v669_v43, 4  ;;  %v798_v11 = vld [vmem:[#allocation10] sm:$0xf] }
 0x2ae   :  { %v667_v29 = vmul.f32 %v664_v16, %v262_v22  ;;  %v632_v1 = vsel %vm172_vm1, %v623_v31, %v1670_v55  ;;  %v805_v43 = vld.sshfl [vmem:[#allocation1 + $0x8] sm:$0xff pattern:$0x75316420] }
 0x2af   :  { %v764_v25 = vrot.slane %v684_v4, 4  ;;  %v791_v12 = vsel %vm484_vm2, %v1602_v58, %v763_v19  ;;  %v635_v22 = vmul.f32 %v632_v1, %v186_v51 }
 0x2b0   :  { %860 = vmatpush.msrb.mxu1 %v791_v12  ;;  %v643_v49 = vpop.permute.xlu1 %642  ;;  %v751_v37 = vrot.slane %v667_v29, 4 }
 0x2b1   :  { %v792_v42 = vsel %vm484_vm2, %v1630_v13, %v764_v25  ;;  %v646_v20 = vsel %vm216_vm7, %v643_v49, %v645_v32  ;;  %v647_v47 = vsel %vm216_vm7, %v1690_v18, %v643_v49  ;;  %v629_v41 = vpop.permute.xlu0 %628  ;;  %v631_v13 = vsel %vm172_vm1, %v1670_v55, %v627_v35 }
 0x2b2   :  { %880 = vmatpush.msrb.mxu2 %v792_v42  ;;  %v652_v3 = vmul.f32 %v647_v47, %v1474_v33  ;;  %v653_v58 = vmul.f32 %v646_v20, %v1472_v57  ;;  %v630_v21 = vsel %vm172_vm1, %v627_v35, %v629_v41  ;;  %v636_v34 = vmul.f32 %v631_v13, %v1863_v24 }
 0x2b3   :  { %v1864_v33 = vrot.slane %v1287_v59, 4  ;;  %v665_v35 = vsel %vm248_vm5, %v1708_v2, %v1688_v53  ;;  %v633_v7 = vsel %vm172_vm1, %v629_v41, %v623_v31  ;;  %v739_v25 = vrot.slane %v635_v22, 4 }
 0x2b4   :  { %v788_v0 = vsel %vm484_vm2, %v652_v3, %v752_v46  ;;  %v789_v61 = vsel %vm484_vm2, %v653_v58, %v753_v28  ;;  %v740_v26 = vrot.slane %v636_v34, 4  ;;  %v666_v36 = vmul.f32 %v665_v35, %v261_v54 }
 0x2b5   :  { %881 = vmatpush.msrb.mxu2 %v788_v0  ;;  %901 = vmatpush.msrb.mxu3 %v789_v61  ;;  %v637_v10 = vmul.f32 %v630_v21, %v1864_v33  ;;  %v634_v27 = vmul.f32 %v633_v7, %v185_v50 }
 0x2b6   :  { %v750_v14 = vrot.slane %v666_v36, 4 }
 0x2b7   :  { %v741_v44 = vrot.slane %v637_v10, 4  ;;  %v738_v38 = vrot.slane %v634_v27, 4 }
 0x2b8   :  { %v613_v57 = vpop.permute.xlu1 %612 }
 0x2b9   :  { %v611_v48 = vpop.permute.xlu0 %610 }
 0x2ba   :  { %v614_v30 = vsel %vm140_vm0, %v611_v48, %v613_v57  ;;  %v615_v59 = vsel %vm140_vm0, %v1692_v9, %v611_v48 }
 0x2bb   :  { %v620_v5 = vmul.f32 %v615_v59, %v1865_v56  ;;  %v621_v52 = vmul.f32 %v614_v30, %v1866_v23 }
 0x2bd   :  { %v784_v53 = vsel %vm484_vm2, %v620_v5, %v740_v26  ;;  %v785_v2 = vsel %vm484_vm2, %v621_v52, %v741_v44 }
 0x2be   :  { %882 = vmatpush.msrb.mxu2 %v784_v53  ;;  %902 = vmatpush.msrb.mxu3 %v785_v2 }
 0x2bf   :  { %953 = vmatmul.msk.f32.vlgmr.msrb.gmra.mxu3 %vm506_vm9, %v798_v11  ;;  %951 = vmatmul.msk.f32.vlgmr.msrb.gmra.mxu2 %vm506_vm9, %v798_v11 }
 0x2c0   :  { %v607_v45 = vpop.permute.xlu1 %606 }
 0x2c1   :  { %v616_v54 = vsel %vm140_vm0, %v607_v45, %v1692_v9  ;;  %v617_v55 = vsel %vm140_vm0, %v613_v57, %v607_v45  ;;  %v639_v4 = vpop.permute.xlu0 %638 }
 0x2c2   :  { %v648_v19 = vsel %vm216_vm7, %v639_v4, %v1690_v18  ;;  %v649_v17 = vsel %vm216_vm7, %v645_v32, %v639_v4  ;;  %v618_v39 = vmul.f32 %v617_v55, %v1578_v15  ;;  %v619_v50 = vmul.f32 %v616_v54, %v1580_v63  ;;  %v804_v32 = vld.sshfl [vmem:[#allocation1] sm:$0xff pattern:$0x75316420] }
 0x2c3   :  { %v650_v51 = vmul.f32 %v649_v17, %v1545_v62  ;;  %v651_v9 = vmul.f32 %v648_v19, %v1547_v40  ;;  %v807_v62 = vld.sshfl [vmem:[#allocation1 + $0x18] sm:$0xff pattern:$0x75316420]  ;;  %v806_v40 = vld.sshfl [vmem:[#allocation1 + $0x10] sm:$0xff pattern:$0x75316420] }
 0x2c4   :  { %v782_v18 = vsel %vm484_vm2, %v618_v39, %v738_v38  ;;  %v783_v60 = vsel %vm484_vm2, %v619_v50, %v739_v25 }
 0x2c5   :  { %v786_v6 = vsel %vm484_vm2, %v650_v51, %v750_v14  ;;  %v787_v8 = vsel %vm484_vm2, %v651_v9, %v751_v37 }
 0x2c6   :  { %841 = vmatpush.msrb.mxu0 %v786_v6  ;;  %861 = vmatpush.msrb.mxu1 %v787_v8 }
 0x2c8   :  { %842 = vmatpush.msrb.mxu0 %v782_v18  ;;  %862 = vmatpush.msrb.mxu1 %v783_v60 }
 0x2c9   :  { %949 = vmatmul.msk.f32.vlgmr.msrb.gmra.mxu1 %vm506_vm9, %v798_v11  ;;  %947 = vmatmul.msk.f32.vlgmr.msrb.gmra.mxu0 %vm506_vm9, %v798_v11 }
 0x342   :  { %v904_v15 = vpop.f32.mrf.mxu3  ;;  %v884_v63 = vpop.f32.mrf.mxu2 }
 0x343   :  { %v905_v12 = vadd.f32 %v904_v15, %v807_v62  ;;  %v885_v42 = vadd.f32 %v884_v63, %v806_v40 }
 0x345   :  { %v912_v49 = vrot.slane %v905_v12, 4 }
 0x346   :  { %v864_v20 = vpop.f32.mrf.mxu1  ;;  %v844_v47 = vpop.f32.mrf.mxu0 }
 0x347   :  { %v865_v41 = vadd.f32 %v864_v20, %v805_v43  ;;  %v845_v46 = vadd.f32 %v844_v47, %v804_v32  ;;  %v914_v28 = vsel %vm484_vm2, %v885_v42, %v912_v49 }
 0x348   :  { %918 = vst [vmem:[#allocation11 + $0x8] sm:$0xff] %v914_v28 }
 0x349   :  { %v911_v3 = vrot.slane %v865_v41, 4 }
 0x34b   :  { %v913_v58 = vsel %vm484_vm2, %v845_v46, %v911_v3 }
 0x34c   :  { %917 = vst [vmem:[#allocation11] sm:$0xff] %v913_v58 }
 0x34d   :  { %929 = dma.vmem_to_hbm [thread:$0]  %s925_s24, 256, %s927_s27, [#allocation4]  }
 0x34e   :  { %1128 = dma.done.wait [#allocation4], 256  }
 0x34f   :  { %1129 = vsyncadd [#allocation4], 4294967040 }
 0x350   :  { %934 = vsyncpa [#allocation3], 1 }
 0x351   :  { %935 = vsyncpa [#allocation6], 1 }
 0x352   :  { %936 = vsyncpa [#allocation9], 1 }
 0x353   :  { %937 = vsyncpa [#allocation4], 1 }

</bundles_post_ra>
